<compile_context>
chip_gen: v7x
topology: tpu7x:2x2x1
jax: 0.10.0
libtpu: 0.0.40
codegen_flags: <defaults>
</compile_context>

<pallas_src>
import functools

import jax
import jax.numpy as jnp
import numpy as np
from jax.experimental import pallas as pl
from jax.experimental.pallas import tpu as pltpu

K = 3  # depthwise kernel size (k=3, stride=1, pad=1, groups=C, no bias)


def frelu_kernel(x_ref, p_ref, m_ref, o_ref, *, width):
    """One (TN, TC, H*W) block of  max(x, bn(depthwise_conv3x3(x))).

    x_ref: (TN, TC, HW)  activations, caller dtype, lane-dense (HW on lanes).
    p_ref: (10, TC, 1)   f32 folded params: row 3*i+j is the BN-scaled conv tap
                         for row offset i-1 and column offset j-1; row 9 is the
                         folded BN bias.  TC on sublanes -> cheap lane splat.
    m_ref: (4, HW)       f32 0/1 keep-masks along the flat H*W axis:
                         [not-first-row, not-last-row, not-first-col, not-last-col].
    """
    hw = x_ref.shape[-1]
    xf = x_ref[...].astype(jnp.float32)
    p = p_ref[...]        # hoisted once: 9 taps + bias stay resident
    m = m_ref[...]        # hoisted once: boundary masks

    # Row neighbours via XLU lane-rolls of the flat H*W axis (+-W) and a
    # boundary-mask multiply (VPU) -- no block-sized zero-concat copies.
    x_up = pltpu.roll(xf, width, 2) * m[0]          # x[r-1, c]  (first row -> 0)
    x_down = pltpu.roll(xf, hw - width, 2) * m[1]   # x[r+1, c]  (last row  -> 0)

    # Per-column partial sums over the three row taps (f32 accumulation).
    def col_sum(j):
        a = x_up * p[j]          # tap (i=0, j)
        a = a + xf * p[3 + j]    # tap (i=1, j)
        a = a + x_down * p[6 + j]  # tap (i=2, j)
        return a

    a0 = col_sum(0)   # contributes from column c-1
    a1 = col_sum(1)
    a2 = col_sum(2)   # contributes from column c+1

    y = a1
    y = y + pltpu.roll(a0, 1, 2) * m[2]        # shift right one column (col 0   -> 0)
    y = y + pltpu.roll(a2, hw - 1, 2) * m[3]   # shift left  one column (col W-1 -> 0)
    y = y + p[9]                               # folded BN bias

    o_ref[...] = jnp.maximum(xf, y).astype(o_ref.dtype)


def _vmem_capacity_bytes():
    try:
        cap = getattr(pltpu.get_tpu_info(), "vmem_capacity_bytes", None)
        if cap:
            return int(cap)
    except Exception:
        pass
    return 64 * 1024 * 1024  # conservative default (v7x per-TensorCore VMEM)


def _divisors(n):
    return [d for d in range(1, n + 1) if n % d == 0]


def _pick_tiles(n, c, hw, budget_elems):
    """Largest (TN, TC) divisors keeping TN*TC*HW under budget_elems.

    TC must be a multiple of 8 (sublane tile) or equal the full C so the
    (8, 128) block-shape rule holds; the lane dim is the full H*W.
    """
    tc_cands = [d for d in _divisors(c) if d % 8 == 0 or d == c]
    fit = [d for d in tc_cands if d * hw <= budget_elems]
    tc = max(fit) if fit else min(tc_cands)
    fit_n = [d for d in _divisors(n) if d * tc * hw <= budget_elems]
    tn = max(fit_n) if fit_n else 1
    return tn, tc


def frelu_forward(x_nchw, w_dw, bn_gamma, bn_beta, bn_mean, bn_var, eps=1e-5,
                  tile_n=None, tile_c=None):
    """FReLU forward: max(x, BN(depthwise_conv3x3(x))), eval-mode BN.

    x_nchw: (N, C, H, W) activations (I/O stays in this dtype).
    w_dw:   (C, 1, K, K) PyTorch depthwise conv weight (groups=C, no bias).
    """
    N, C, H, W = x_nchw.shape
    HW = H * W

    # Fold eval-mode BatchNorm into the conv taps + per-channel bias (f32).
    scale = bn_gamma.astype(jnp.float32) / jnp.sqrt(bn_var.astype(jnp.float32) + eps)
    bias = bn_beta.astype(jnp.float32) - bn_mean.astype(jnp.float32) * scale
    taps = w_dw[:, 0, :, :].astype(jnp.float32) * scale[:, None, None]      # (C,K,K)
    taps = taps.reshape(C, K * K).T                                         # (K*K,C)
    params = jnp.concatenate([taps, bias[None, :]], axis=0)[:, :, None]     # (10,C,1)

    # 0/1 keep-masks over the flat H*W axis (computed once in XLA so the
    # kernel needs no in-kernel iota / integer mod; applied with multiplies).
    pos = jnp.arange(HW, dtype=jnp.int32)
    col = pos % W
    masks = jnp.stack([
        pos >= W,          # not first row  (for the +W roll)
        pos < HW - W,      # not last row   (for the -W roll)
        col != 0,          # not first col  (for the +1 roll)
        col != W - 1,      # not last col   (for the -1 roll)
    ]).astype(jnp.float32)                                                  # (4,HW)

    # Generation-aware block sizing: ~8 block-sized f32 temporaries live in
    # the kernel plus double-buffered in/out blocks; keep that near half of
    # this generation's VMEM (fits v7x's 64 MiB, uses headroom on v5e/v6e).
    vmem_cap = _vmem_capacity_bytes()
    per_elem_bytes = 4 * x_nchw.dtype.itemsize + 8 * 4
    budget_elems = max(128 * 1024, (vmem_cap // 2) // per_elem_bytes)
    TN, TC = _pick_tiles(N, C, HW, budget_elems)
    if tile_n is not None:
        TN = tile_n
    if tile_c is not None:
        TC = tile_c
    assert N % TN == 0 and C % TC == 0
    assert TC % 8 == 0 or TC == C, "TC must be a multiple of 8 or the full C"

    # Lane-dense view: contiguous NCHW -> (N, C, H*W) is a free reshape.
    x_flat = x_nchw.reshape(N, C, HW)

    # TODO(synk): for very large single-channel H*W an extra H-tile grid axis
    # with an in-kernel halo would be needed; typical CSPdarknet FReLU layers
    # fit the per-(N, C) blocks used here.
    out_flat = pl.pallas_call(
        functools.partial(frelu_kernel, width=W),
        out_shape=jax.ShapeDtypeStruct((N, C, HW), x_nchw.dtype),
        grid_spec=pltpu.PrefetchScalarGridSpec(
            num_scalar_prefetch=0,
            # C outermost / N innermost: the param and mask block indices are
            # constant over the inner axis, so Pallas does not re-fetch them.
            grid=(C // TC, N // TN),
            in_specs=[
                pl.BlockSpec((TN, TC, HW), lambda c, n: (n, c, 0)),
                pl.BlockSpec((K * K + 1, TC, 1), lambda c, n: (0, c, 0)),
                pl.BlockSpec((4, HW), lambda c, n: (0, 0)),
            ],
            out_specs=pl.BlockSpec((TN, TC, HW), lambda c, n: (n, c, 0)),
        ),
        compiler_params=pltpu.CompilerParams(
            dimension_semantics=("parallel", "parallel"),
            vmem_limit_bytes=max(32 * 1024 * 1024, vmem_cap * 3 // 4),
        ),
    )(x_flat, params, masks)
    return out_flat.reshape(N, C, H, W)


def ref_frelu(x_nchw, w_dw, gamma, beta, mean, var, eps=1e-5):
    """Pure-JAX reference matching the PyTorch forward (eval-mode BN)."""
    C = x_nchw.shape[1]
    y = jax.lax.conv_general_dilated(
        x_nchw, w_dw,
        window_strides=(1, 1),
        padding=((1, 1), (1, 1)),
        feature_group_count=C,
        dimension_numbers=("NCHW", "OIHW", "NCHW"),
    )
    yhat = (y - mean[None, :, None, None]) / jnp.sqrt(var + eps)[None, :, None, None]
    yhat = yhat * gamma[None, :, None, None] + beta[None, :, None, None]
    return jnp.maximum(x_nchw, yhat)


def _run_case(key, N, C, H, W, dtype=jnp.float32, rtol=1e-5, atol=1e-5, **kw):
    k1, k2, k3, k4, k5, k6 = jax.random.split(key, 6)
    x = jax.random.normal(k1, (N, C, H, W), dtype=jnp.float32).astype(dtype)
    w_dw = 0.1 * jax.random.normal(k2, (C, 1, K, K), dtype=jnp.float32)   # conv.weight
    gamma = 1.0 + 0.1 * jax.random.normal(k3, (C,), dtype=jnp.float32)    # bn.weight
    beta = 0.1 * jax.random.normal(k4, (C,), dtype=jnp.float32)           # bn.bias
    mean = 0.05 * jax.random.normal(k5, (C,), dtype=jnp.float32)          # bn.running_mean
    var = jnp.abs(jax.random.normal(k6, (C,), dtype=jnp.float32)) + 0.5   # bn.running_var

    out = jax.block_until_ready(frelu_forward(x, w_dw, gamma, beta, mean, var, **kw))
    ref = ref_frelu(x.astype(jnp.float32), w_dw, gamma, beta, mean, var)
    assert out.shape == (N, C, H, W) and out.dtype == jnp.dtype(dtype)
    np.testing.assert_allclose(np.asarray(out, dtype=np.float32), np.asarray(ref),
                               rtol=rtol, atol=atol)


if __name__ == "__main__":
    key = jax.random.PRNGKey(0)
    k_a, k_b, k_c = jax.random.split(key, 3)
    # Module-consistent small shape: whole problem in one block -> 1 grid step.
    _run_case(k_a, N=2, C=4, H=16, W=16)
    # Multi-step grid over N (params/masks stay resident on the inner axis).
    _run_case(k_b, N=2, C=8, H=32, W=32, tile_n=1)
    # bf16 I/O path with tiling over both C and N (f32 accumulation inside).
    _run_case(k_c, N=2, C=16, H=16, W=16, dtype=jnp.bfloat16,
              rtol=3e-2, atol=3e-2, tile_n=1, tile_c=8)
    print("KERNEL_OK")
</pallas_src>

<mosaic_0001>
module attributes {stable_mosaic.version = 11 : i64} {
  func.func @frelu_kernel(%arg0: i32, %arg1: i32, %arg2: memref<2x4x256xf32, #tpu.memory_space<vmem>>, %arg3: memref<10x4x1xf32, #tpu.memory_space<vmem>>, %arg4: memref<4x256xf32, #tpu.memory_space<vmem>>, %arg5: memref<2x4x256xf32, #tpu.memory_space<vmem>>) attributes {dimension_semantics = [#tpu.dimension_semantics<parallel>, #tpu.dimension_semantics<parallel>], iteration_bounds = array<i64: 1, 1>, scalar_prefetch = 0 : i64, scratch_operands = 0 : i64, tpu.core_type = #tpu.core_type<tc>, window_params = [{transform_indices = @transform_0, window_bounds = array<i64: 2, 4, 256>}, {transform_indices = @transform_1, window_bounds = array<i64: 10, 4, 1>}, {pipeline_mode = #tpu.pipeline_mode<synchronous>, transform_indices = @transform_2, window_bounds = array<i64: 4, 256>}, {transform_indices = @transform_3, window_bounds = array<i64: 2, 4, 256>}]} {
    %c0 = arith.constant 0 : index
    %c0_0 = arith.constant 0 : index
    %c0_1 = arith.constant 0 : index
    %0 = vector.load %arg2[%c0, %c0_0, %c0_1] : memref<2x4x256xf32, #tpu.memory_space<vmem>>, vector<2x4x256xf32>
    %c0_2 = arith.constant 0 : index
    %c0_3 = arith.constant 0 : index
    %c0_4 = arith.constant 0 : index
    %1 = vector.load %arg3[%c0_2, %c0_3, %c0_4] : memref<10x4x1xf32, #tpu.memory_space<vmem>>, vector<10x4x1xf32>
    %c0_5 = arith.constant 0 : index
    %c0_6 = arith.constant 0 : index
    %2 = vector.load %arg4[%c0_5, %c0_6] : memref<4x256xf32, #tpu.memory_space<vmem>>, vector<4x256xf32>
    %c16_i32 = arith.constant 16 : i32
    %3 = tpu.dynamic_rotate %0 by %c16_i32 dim 2 : vector<2x4x256xf32>, i32 -> vector<2x4x256xf32>
    %4 = vector.extract_strided_slice %2 {offsets = [0, 0], sizes = [1, 256], strides = [1, 1]} : vector<4x256xf32> to vector<1x256xf32>
    %5 = vector.shape_cast %4 : vector<1x256xf32> to vector<256xf32>
    %6 = vector.shape_cast %5 : vector<256xf32> to vector<1x1x256xf32>
    %7 = vector.broadcast %6 : vector<1x1x256xf32> to vector<2x4x256xf32>
    %8 = arith.mulf %3, %7 : vector<2x4x256xf32>
    %c240_i32 = arith.constant 240 : i32
    %9 = tpu.dynamic_rotate %0 by %c240_i32 dim 2 : vector<2x4x256xf32>, i32 -> vector<2x4x256xf32>
    %10 = vector.extract_strided_slice %2 {offsets = [1, 0], sizes = [1, 256], strides = [1, 1]} : vector<4x256xf32> to vector<1x256xf32>
    %11 = vector.shape_cast %10 : vector<1x256xf32> to vector<256xf32>
    %12 = vector.shape_cast %11 : vector<256xf32> to vector<1x1x256xf32>
    %13 = vector.broadcast %12 : vector<1x1x256xf32> to vector<2x4x256xf32>
    %14 = arith.mulf %9, %13 : vector<2x4x256xf32>
    %15 = vector.extract_strided_slice %1 {offsets = [0, 0, 0], sizes = [1, 4, 1], strides = [1, 1, 1]} : vector<10x4x1xf32> to vector<1x4x1xf32>
    %16 = vector.shape_cast %15 : vector<1x4x1xf32> to vector<4x1xf32>
    %17 = vector.shape_cast %16 : vector<4x1xf32> to vector<1x4x1xf32>
    %18 = vector.broadcast %17 : vector<1x4x1xf32> to vector<2x4x256xf32>
    %19 = arith.mulf %8, %18 : vector<2x4x256xf32>
    %20 = vector.extract_strided_slice %1 {offsets = [3, 0, 0], sizes = [1, 4, 1], strides = [1, 1, 1]} : vector<10x4x1xf32> to vector<1x4x1xf32>
    %21 = vector.shape_cast %20 : vector<1x4x1xf32> to vector<4x1xf32>
    %22 = vector.shape_cast %21 : vector<4x1xf32> to vector<1x4x1xf32>
    %23 = vector.broadcast %22 : vector<1x4x1xf32> to vector<2x4x256xf32>
    %24 = arith.mulf %0, %23 : vector<2x4x256xf32>
    %25 = arith.addf %19, %24 : vector<2x4x256xf32>
    %26 = vector.extract_strided_slice %1 {offsets = [6, 0, 0], sizes = [1, 4, 1], strides = [1, 1, 1]} : vector<10x4x1xf32> to vector<1x4x1xf32>
    %27 = vector.shape_cast %26 : vector<1x4x1xf32> to vector<4x1xf32>
    %28 = vector.shape_cast %27 : vector<4x1xf32> to vector<1x4x1xf32>
    %29 = vector.broadcast %28 : vector<1x4x1xf32> to vector<2x4x256xf32>
    %30 = arith.mulf %14, %29 : vector<2x4x256xf32>
    %31 = arith.addf %25, %30 : vector<2x4x256xf32>
    %32 = vector.extract_strided_slice %1 {offsets = [1, 0, 0], sizes = [1, 4, 1], strides = [1, 1, 1]} : vector<10x4x1xf32> to vector<1x4x1xf32>
    %33 = vector.shape_cast %32 : vector<1x4x1xf32> to vector<4x1xf32>
    %34 = vector.shape_cast %33 : vector<4x1xf32> to vector<1x4x1xf32>
    %35 = vector.broadcast %34 : vector<1x4x1xf32> to vector<2x4x256xf32>
    %36 = arith.mulf %8, %35 : vector<2x4x256xf32>
    %37 = vector.extract_strided_slice %1 {offsets = [4, 0, 0], sizes = [1, 4, 1], strides = [1, 1, 1]} : vector<10x4x1xf32> to vector<1x4x1xf32>
    %38 = vector.shape_cast %37 : vector<1x4x1xf32> to vector<4x1xf32>
    %39 = vector.shape_cast %38 : vector<4x1xf32> to vector<1x4x1xf32>
    %40 = vector.broadcast %39 : vector<1x4x1xf32> to vector<2x4x256xf32>
    %41 = arith.mulf %0, %40 : vector<2x4x256xf32>
    %42 = arith.addf %36, %41 : vector<2x4x256xf32>
    %43 = vector.extract_strided_slice %1 {offsets = [7, 0, 0], sizes = [1, 4, 1], strides = [1, 1, 1]} : vector<10x4x1xf32> to vector<1x4x1xf32>
    %44 = vector.shape_cast %43 : vector<1x4x1xf32> to vector<4x1xf32>
    %45 = vector.shape_cast %44 : vector<4x1xf32> to vector<1x4x1xf32>
    %46 = vector.broadcast %45 : vector<1x4x1xf32> to vector<2x4x256xf32>
    %47 = arith.mulf %14, %46 : vector<2x4x256xf32>
    %48 = arith.addf %42, %47 : vector<2x4x256xf32>
    %49 = vector.extract_strided_slice %1 {offsets = [2, 0, 0], sizes = [1, 4, 1], strides = [1, 1, 1]} : vector<10x4x1xf32> to vector<1x4x1xf32>
    %50 = vector.shape_cast %49 : vector<1x4x1xf32> to vector<4x1xf32>
    %51 = vector.shape_cast %50 : vector<4x1xf32> to vector<1x4x1xf32>
    %52 = vector.broadcast %51 : vector<1x4x1xf32> to vector<2x4x256xf32>
    %53 = arith.mulf %8, %52 : vector<2x4x256xf32>
    %54 = vector.extract_strided_slice %1 {offsets = [5, 0, 0], sizes = [1, 4, 1], strides = [1, 1, 1]} : vector<10x4x1xf32> to vector<1x4x1xf32>
    %55 = vector.shape_cast %54 : vector<1x4x1xf32> to vector<4x1xf32>
    %56 = vector.shape_cast %55 : vector<4x1xf32> to vector<1x4x1xf32>
    %57 = vector.broadcast %56 : vector<1x4x1xf32> to vector<2x4x256xf32>
    %58 = arith.mulf %0, %57 : vector<2x4x256xf32>
    %59 = arith.addf %53, %58 : vector<2x4x256xf32>
    %60 = vector.extract_strided_slice %1 {offsets = [8, 0, 0], sizes = [1, 4, 1], strides = [1, 1, 1]} : vector<10x4x1xf32> to vector<1x4x1xf32>
    %61 = vector.shape_cast %60 : vector<1x4x1xf32> to vector<4x1xf32>
    %62 = vector.shape_cast %61 : vector<4x1xf32> to vector<1x4x1xf32>
    %63 = vector.broadcast %62 : vector<1x4x1xf32> to vector<2x4x256xf32>
    %64 = arith.mulf %14, %63 : vector<2x4x256xf32>
    %65 = arith.addf %59, %64 : vector<2x4x256xf32>
    %c1_i32 = arith.constant 1 : i32
    %66 = tpu.dynamic_rotate %31 by %c1_i32 dim 2 : vector<2x4x256xf32>, i32 -> vector<2x4x256xf32>
    %67 = vector.extract_strided_slice %2 {offsets = [2, 0], sizes = [1, 256], strides = [1, 1]} : vector<4x256xf32> to vector<1x256xf32>
    %68 = vector.shape_cast %67 : vector<1x256xf32> to vector<256xf32>
    %69 = vector.shape_cast %68 : vector<256xf32> to vector<1x1x256xf32>
    %70 = vector.broadcast %69 : vector<1x1x256xf32> to vector<2x4x256xf32>
    %71 = arith.mulf %66, %70 : vector<2x4x256xf32>
    %72 = arith.addf %48, %71 : vector<2x4x256xf32>
    %c255_i32 = arith.constant 255 : i32
    %73 = tpu.dynamic_rotate %65 by %c255_i32 dim 2 : vector<2x4x256xf32>, i32 -> vector<2x4x256xf32>
    %74 = vector.extract_strided_slice %2 {offsets = [3, 0], sizes = [1, 256], strides = [1, 1]} : vector<4x256xf32> to vector<1x256xf32>
    %75 = vector.shape_cast %74 : vector<1x256xf32> to vector<256xf32>
    %76 = vector.shape_cast %75 : vector<256xf32> to vector<1x1x256xf32>
    %77 = vector.broadcast %76 : vector<1x1x256xf32> to vector<2x4x256xf32>
    %78 = arith.mulf %73, %77 : vector<2x4x256xf32>
    %79 = arith.addf %72, %78 : vector<2x4x256xf32>
    %80 = vector.extract_strided_slice %1 {offsets = [9, 0, 0], sizes = [1, 4, 1], strides = [1, 1, 1]} : vector<10x4x1xf32> to vector<1x4x1xf32>
    %81 = vector.shape_cast %80 : vector<1x4x1xf32> to vector<4x1xf32>
    %82 = vector.shape_cast %81 : vector<4x1xf32> to vector<1x4x1xf32>
    %83 = vector.broadcast %82 : vector<1x4x1xf32> to vector<2x4x256xf32>
    %84 = arith.addf %79, %83 : vector<2x4x256xf32>
    %85 = arith.maximumf %0, %84 : vector<2x4x256xf32>
    %c0_7 = arith.constant 0 : index
    %c0_8 = arith.constant 0 : index
    %c0_9 = arith.constant 0 : index
    %86 = vector.load %arg5[%c0_7, %c0_8, %c0_9] : memref<2x4x256xf32, #tpu.memory_space<vmem>>, vector<2x4x256xf32>
    tpu.vector_store %arg5[%c0_7, %c0_8, %c0_9], %85 {strides = array<i32>} : memref<2x4x256xf32, #tpu.memory_space<vmem>>, vector<2x4x256xf32>,
    return
  }
  func.func @transform_0(%arg0: i32, %arg1: i32) -> (i32, i32, i32) {
    %c0_i32 = arith.constant 0 : i32
    %c0_i32_0 = arith.constant 0 : i32
    return %arg1, %arg0, %c0_i32 : i32, i32, i32
  }
  func.func @transform_1(%arg0: i32, %arg1: i32) -> (i32, i32, i32) {
    %c0_i32 = arith.constant 0 : i32
    %c0_i32_0 = arith.constant 0 : i32
    %c0_i32_1 = arith.constant 0 : i32
    return %c0_i32, %arg0, %c0_i32_0 : i32, i32, i32
  }
  func.func @transform_2(%arg0: i32, %arg1: i32) -> (i32, i32) {
    %c0_i32 = arith.constant 0 : i32
    %c0_i32_0 = arith.constant 0 : i32
    %c0_i32_1 = arith.constant 0 : i32
    return %c0_i32, %c0_i32_0 : i32, i32
  }
  func.func @transform_3(%arg0: i32, %arg1: i32) -> (i32, i32, i32) {
    %c0_i32 = arith.constant 0 : i32
    %c0_i32_0 = arith.constant 0 : i32
    return %arg1, %arg0, %c0_i32 : i32, i32, i32
  }
}

</mosaic_0001>

<bundles_post_ra>
// kernel: tpu_custom_call.1
= control target key start
LH: loop header
LB: loop body
LE: loop exit
PB: predicated region body
PF: predicated region fallthrough
CT: control target
= control target key end

     0   :  { %v397_v2 = vmov 0   ;;  %s602_s0 = inlined_call_operand.vmem [shape: f32[2,4,256], index: 0, kind: input, shape index: {}]   ;;  %s603_s1 = inlined_call_operand.vmem [shape: f32[10,4,1], index: 1, kind: input, shape index: {}]   ;;  %s604_s2 = inlined_call_operand.vmem [shape: f32[4,256], index: 2, kind: input, shape index: {}]   ;;  %s605_s3 = inlined_call_operand.hbm [shape: f32[2,4,256], index: 3, kind: output, shape index: {}]  }
   0x1   :  { %v20_v0 = vld [vmem:[%s603_s1 + $0xc] sm:$0xf]  ;;  %v17_v1 = vld [vmem:[%s603_s1] sm:$0xf]  ;;  %370 = vset.pattern.permute.xlu1 %v397_v2  ;;  %369 = vset.pattern.permute.xlu0 %v397_v2  ;;  %v22_v3 = vld [vmem:[%s603_s1 + $0x14] sm:$0xf] }
   0x2   :  { %118 = vperm.xlu0 %369, %v20_v0   ;;  %109 = vperm.xlu1 %370, %v17_v1   ;;  %v23_v4 = vld [vmem:[%s603_s1 + $0x18] sm:$0xf] }
   0x3   :  { %8 = vsyncpa [#allocation3], 0  ;;  %v19_v5 = vld [vmem:[%s603_s1 + $0x8] sm:$0xf]  ;;  %v444_v6 = vld [vmem:[%s602_s0] sm:$0xff]  ;;  %s398_s24 = smov 16   ;;  %v42_v17 = vlaneseq }
   0x4   :  { %v30_v7 = vcombine.high %v444_v6, %v444_v6  ;;  %v452_v8 = vld [vmem:[%s602_s0 + $0x8] sm:$0xff]  ;;  %v25_v10 = vld [vmem:[%s603_s1 + $0x20] sm:$0xf]  ;;  %s399_s29 = smov 112   ;;  %v21_v11 = vld [vmem:[%s603_s1 + $0x10] sm:$0xf] }
   0x5   :  { %v31_v9 = vcombine.high %v452_v8, %v452_v8  ;;  %v18_v12 = vld [vmem:[%s603_s1 + $0x4] sm:$0xf]  ;;  %v24_v13 = vld [vmem:[%s603_s1 + $0x1c] sm:$0xf]  ;;  %v400_v18 = vmov 839922192  }
   0x6   :  { %210 = vperm.xlu0 %369, %v22_v3   ;;  %142 = vperm.xlu1 %370, %v23_v4   ;;  %v26_v14 = vld [vmem:[%s603_s1 + $0x24] sm:$0xf]  ;;  %v121_v19 = vunpack.c.l.s4 %v400_v18  ;;  %v478_v22 = vshrl.u32 %v42_v17, 7  ;;  %v489_v29 = vand.u32 127, %v42_v17  ;;  %s402_s11 = smov 127   ;;  %s403_s12 = smov [#allocation2]  }
   0x7   :  { %v486_v27 = vld [vmem:[%s604_s2] sm:$0xff]  ;;  %s401_s2 = smov 1   ;;  %s349_s13 = sshll.u32 %s403_s12, 4  ;;  %s350_s13 = int_to_ptr.vmem [resolvable:$true] %s349_s13 }
   0x8   :  { %v122_v23 = vunpack.c.0.s8 %v121_v19  ;;  %v52_v24 = vsub.s32 0, %v478_v22  ;;  %v56_v28 = vsub.s32 4, %v478_v22  ;;  %vm44_vm0 = vcmp.lt.s32.totalorder %v489_v29, 16  ;;  %s373_s14 = scalar_lea.vmem %s350_s13, 256  ;;  %p378_p1 = scmp.lt.s32.totalorder %s350_s13, %s350_s13 }
   0x9   :  { %v87_v35 = vsub.s32 1, %v478_v22  ;;  %v91_v36 = vsub.s32 5, %v478_v22  ;;  %vm80_vm1 = vcmp.lt.s32.totalorder %v489_v29, 112  ;;  %vm253_vm2 = vcmp.lt.s32.totalorder %v489_v29, 1  ;;  %p374_p0 = scmp.ne.s32.totalorder %s350_s13, %s373_s14  ;;  %p379_p2 = scmp.lt.s32.totalorder %s373_s14, %s373_s14 }
   0xa   :  { %201 = vperm.xlu0 %369, %v19_v5   ;;  %34 = vrot.lane.b32.xlu1 %v444_v6, %s398_s24  ;;  %v125_v30 = vsub.s32 %v122_v23, %v478_v22  ;;  %v53_v31 = vrot.slane %v486_v27, %v52_v24  ;;  %v57_v33 = vrot.slane %v486_v27, %v56_v28  ;;  %vm292_vm3 = vcmp.lt.s32.totalorder %v489_v29, 127 }
   0xb   :  { %v88_v46 = vrot.slane %v486_v27, %v87_v35  ;;  %v92_v47 = vrot.slane %v486_v27, %v91_v36  ;;  %p380_p3 = por %p379_p2, %p378_p1 }
   0xc   :  { %v63_v38 = vrot.slane %v53_v31, %v52_v24  ;;  %v67_v40 = vrot.slane %v57_v33, %v52_v24 }
   0xd   :  { %v98_v58 = vrot.slane %v88_v46, %v87_v35  ;;  %v102_v59 = vrot.slane %v92_v47, %v87_v35  ;;  %p381_p4 = pnand %p380_p3, %p374_p0 }
   0xe   :  { %36 = vrot.lane.b32.xlu0 %v452_v8, %s398_s24  ;;  %38 = vrot.lane.b32.xlu1 %v30_v7, %s398_s24 }
  0x12   :  { %40 = vrot.lane.b32.xlu0 %v31_v9, %s398_s24  ;;  %234 = vperm.xlu1 %370, %v25_v10  }
  0x16   :  { %72 = vrot.lane.b32.xlu0 %v444_v6, %s399_s29  ;;  %74 = vrot.lane.b32.xlu1 %v452_v8, %s399_s29 }
  0x1a   :  { %76 = vrot.lane.b32.xlu0 %v30_v7, %s399_s29  ;;  %78 = vrot.lane.b32.xlu1 %v31_v9, %s399_s29 }
  0x1e   :  { %164 = vperm.xlu0 %369, %v21_v11   ;;  %155 = vperm.xlu1 %370, %v18_v12  }
  0x22   :  { %188 = vperm.xlu0 %369, %v24_v13   ;;  %325 = vperm.xlu1 %370, %v26_v14  }
  0x81   :  { %v119_v15 = vpop.permute.xlu0 %118  ;;  %v474_v16 = vpop.permute.xlu1 %109 }
  0x82   :  { %v126_v37 = vrot.slane %v119_v15, %v125_v30 }
  0x84   :  { %v508_v48 = vmul.f32 %v126_v37, %v444_v6  ;;  %v511_v51 = vmul.f32 %v126_v37, %v452_v8 }
  0x85   :  { %v211_v20 = vpop.permute.xlu0 %210  ;;  %v476_v21 = vpop.permute.xlu1 %142 }
  0x86   :  { %v218_v39 = vrot.slane %v211_v20, %v125_v30  ;;  %v132_v60 = vcombine.high %v508_v48, %v508_v48  ;;  %v133_v0 = vcombine.high %v511_v51, %v511_v51 }
  0x88   :  { %v514_v52 = vmul.f32 %v218_v39, %v444_v6  ;;  %v517_v53 = vmul.f32 %v218_v39, %v452_v8 }
  0x89   :  { %v481_v25 = vpop.permute.xlu0 %201  ;;  %v35_v26 = vpop.permute.xlu1 %34 }
  0x8a   :  { %v224_v1 = vcombine.high %v514_v52, %v514_v52  ;;  %v225_v2 = vcombine.high %v517_v53, %v517_v53 }
  0x8d   :  { %v37_v32 = vpop.permute.xlu0 %36  ;;  %v39_v34 = vpop.permute.xlu1 %38 }
  0x8e   :  { %v47_v41 = vsel %vm44_vm0, %v39_v34, %v35_v26  ;;  %v45_v44 = vsel %vm44_vm0, %v35_v26, %v39_v34 }
  0x8f   :  { %v68_v49 = vmul.f32 %v63_v38, %v47_v41  ;;  %v69_v54 = vmul.f32 %v67_v40, %v45_v44 }
  0x91   :  { %v41_v42 = vpop.permute.xlu0 %40  ;;  %v499_v43 = vpop.permute.xlu1 %234  ;;  %v112_v61 = vmul.f32 %v474_v16, %v68_v49  ;;  %v204_v62 = vmul.f32 %v481_v25, %v68_v49  ;;  %v113_v3 = vmul.f32 %v474_v16, %v69_v54  ;;  %v205_v12 = vmul.f32 %v481_v25, %v69_v54 }
  0x92   :  { %v48_v45 = vsel %vm44_vm0, %v41_v42, %v37_v32  ;;  %v46_v57 = vsel %vm44_vm0, %v37_v32, %v41_v42 }
  0x93   :  { %v70_v50 = vmul.f32 %v63_v38, %v48_v45  ;;  %v71_v7 = vmul.f32 %v67_v40, %v46_v57  ;;  %v136_v18 = vadd.f32 %v508_v48, %v112_v61  ;;  %v228_v20 = vadd.f32 %v514_v52, %v204_v62 }
  0x94   :  { %v137_v62 = vadd.f32 %v132_v60, %v113_v3  ;;  %v229_v60 = vadd.f32 %v224_v1, %v205_v12 }
  0x95   :  { %v73_v55 = vpop.permute.xlu0 %72  ;;  %v75_v56 = vpop.permute.xlu1 %74  ;;  %v114_v63 = vmul.f32 %v474_v16, %v70_v50  ;;  %v206_v9 = vmul.f32 %v481_v25, %v70_v50  ;;  %v115_v33 = vmul.f32 %v474_v16, %v71_v7 }
  0x97   :  { %v138_v19 = vadd.f32 %v511_v51, %v114_v63  ;;  %v230_v36 = vadd.f32 %v517_v53, %v206_v9  ;;  %v207_v63 = vmul.f32 %v481_v25, %v71_v7  ;;  %v303_v53 = vsub.s32 7, %v478_v22 }
  0x99   :  { %v77_v4 = vpop.permute.xlu0 %76  ;;  %v79_v5 = vpop.permute.xlu1 %78  ;;  %v231_v25 = vadd.f32 %v225_v2, %v207_v63 }
  0x9a   :  { %v81_v10 = vsel %vm80_vm1, %v73_v55, %v77_v4  ;;  %v82_v11 = vsel %vm80_vm1, %v75_v56, %v79_v5  ;;  %v83_v13 = vsel %vm80_vm1, %v77_v4, %v73_v55  ;;  %v84_v17 = vsel %vm80_vm1, %v79_v5, %v75_v56 }
  0x9b   :  { %v103_v14 = vmul.f32 %v98_v58, %v81_v10  ;;  %v105_v15 = vmul.f32 %v98_v58, %v82_v11  ;;  %v104_v34 = vmul.f32 %v102_v59, %v83_v13  ;;  %v106_v37 = vmul.f32 %v102_v59, %v84_v17 }
  0x9c   :  { %v139_v5 = vadd.f32 %v133_v0, %v115_v33 }
  0x9d   :  { %v165_v23 = vpop.permute.xlu0 %164  ;;  %v156_v24 = vpop.permute.xlu1 %155  ;;  %v145_v26 = vmul.f32 %v476_v21, %v103_v14  ;;  %v147_v28 = vmul.f32 %v476_v21, %v105_v15  ;;  %v239_v31 = vmul.f32 %v499_v43, %v105_v15  ;;  %v237_v32 = vmul.f32 %v499_v43, %v103_v14 }
  0x9e   :  { %v172_v35 = vrot.slane %v165_v23, %v125_v30  ;;  %v158_v38 = vmul.f32 %v156_v24, %v68_v49  ;;  %v159_v44 = vmul.f32 %v156_v24, %v69_v54  ;;  %v160_v45 = vmul.f32 %v156_v24, %v70_v50 }
  0x9f   :  { %v149_v39 = vadd.f32 %v145_v26, %v136_v18  ;;  %v151_v40 = vadd.f32 %v147_v28, %v138_v19  ;;  %v161_v46 = vmul.f32 %v156_v24, %v71_v7  ;;  %v243_v16 = vadd.f32 %v239_v31, %v230_v36 }
  0xa0   :  { %v174_v41 = vmul.f32 %v172_v35, %v444_v6  ;;  %v175_v42 = vmul.f32 %v172_v35, %v452_v8  ;;  %v241_v30 = vadd.f32 %v237_v32, %v228_v20  ;;  %v146_v58 = vmul.f32 %v476_v21, %v104_v34 }
  0xa1   :  { %v189_v47 = vpop.permute.xlu0 %188  ;;  %245 = vrot.lane.b32.xlu1 %v149_v39, %s401_s2  ;;  %247 = vrot.lane.b32.xlu0 %v151_v40, %s401_s2  ;;  %v148_v54 = vmul.f32 %v476_v21, %v106_v37  ;;  %v240_v9 = vmul.f32 %v499_v43, %v106_v37  ;;  %v238_v21 = vmul.f32 %v499_v43, %v104_v34  ;;  %v326_v7 = vpop.permute.xlu1 %325  ;;  %v260_v43 = vsub.s32 2, %v478_v22 }
  0xa2   :  { %v178_v48 = vcombine.high %v174_v41, %v174_v41  ;;  %v179_v51 = vcombine.high %v175_v42, %v175_v42  ;;  %v182_v49 = vadd.f32 %v174_v41, %v158_v38  ;;  %v184_v55 = vadd.f32 %v175_v42, %v160_v45 }
  0xa3   :  { %v191_v56 = vmul.f32 %v189_v47, %v103_v14  ;;  %v193_v57 = vmul.f32 %v189_v47, %v105_v15  ;;  %v194_v61 = vmul.f32 %v189_v47, %v106_v37  ;;  %v192_v4 = vmul.f32 %v189_v47, %v104_v34 }
  0xa4   :  { %v183_v50 = vadd.f32 %v178_v48, %v159_v44  ;;  %v185_v59 = vadd.f32 %v179_v51, %v161_v46  ;;  %v150_v14 = vadd.f32 %v146_v58, %v137_v62  ;;  %v152_v15 = vadd.f32 %v148_v54, %v139_v5 }
  0xa5   :  { %286 = vrot.lane.b32.xlu1 %v243_v16, %s402_s11  ;;  %284 = vrot.lane.b32.xlu0 %v241_v30, %s402_s11  ;;  %v197_v10 = vadd.f32 %v193_v57, %v184_v55  ;;  %v195_v13 = vadd.f32 %v191_v56, %v182_v49  ;;  %v244_v0 = vadd.f32 %v240_v9, %v231_v25  ;;  %v264_v18 = vsub.s32 6, %v478_v22 }
  0xa6   :  { %v198_v11 = vadd.f32 %v194_v61, %v185_v59  ;;  %v196_v17 = vadd.f32 %v192_v4, %v183_v50  ;;  %v242_v3 = vadd.f32 %v238_v21, %v229_v60  ;;  %v299_v23 = vsub.s32 3, %v478_v22 }
  0xa7   :  { %v261_v2 = vrot.slane %v486_v27, %v260_v43  ;;  %v265_v52 = vrot.slane %v486_v27, %v264_v18  ;;  %v304_v26 = vrot.slane %v486_v27, %v303_v53 }
  0xa8   :  { %v300_v24 = vrot.slane %v486_v27, %v299_v23 }
  0xa9   :  { %249 = vrot.lane.b32.xlu1 %v150_v14, %s401_s2  ;;  %251 = vrot.lane.b32.xlu0 %v152_v15, %s401_s2  ;;  %v271_v28 = vrot.slane %v261_v2, %v260_v43  ;;  %v275_v31 = vrot.slane %v265_v52, %v260_v43  ;;  %v314_v22 = vrot.slane %v304_v26, %v299_v23 }
  0xaa   :  { %v310_v34 = vrot.slane %v300_v24, %v299_v23 }
  0xad   :  { %290 = vrot.lane.b32.xlu1 %v244_v0, %s402_s11  ;;  %288 = vrot.lane.b32.xlu0 %v242_v3, %s402_s11 }
 0x113   :  { %v248_v19 = vpop.permute.xlu0 %247  ;;  %v246_v20 = vpop.permute.xlu1 %245 }
 0x117   :  { %v285_v1 = vpop.permute.xlu0 %284  ;;  %v287_v12 = vpop.permute.xlu1 %286 }
 0x11b   :  { %v252_v32 = vpop.permute.xlu0 %251  ;;  %v250_v33 = vpop.permute.xlu1 %249 }
 0x11c   :  { %v255_v35 = vsel %vm253_vm2, %v248_v19, %v252_v32  ;;  %v257_v36 = vsel %vm253_vm2, %v252_v32, %v248_v19  ;;  %v254_v37 = vsel %vm253_vm2, %v246_v20, %v250_v33  ;;  %v256_v38 = vsel %vm253_vm2, %v250_v33, %v246_v20 }
 0x11d   :  { %v278_v39 = vmul.f32 %v271_v28, %v257_v36  ;;  %v279_v40 = vmul.f32 %v275_v31, %v255_v35  ;;  %v276_v41 = vmul.f32 %v271_v28, %v256_v38  ;;  %v277_v42 = vmul.f32 %v275_v31, %v254_v37 }
 0x11f   :  { %v282_v44 = vadd.f32 %v278_v39, %v197_v10  ;;  %v283_v27 = vadd.f32 %v279_v40, %v198_v11  ;;  %v280_v45 = vadd.f32 %v276_v41, %v195_v13  ;;  %v281_v46 = vadd.f32 %v277_v42, %v196_v17  ;;  %v289_v47 = vpop.permute.xlu0 %288  ;;  %v291_v16 = vpop.permute.xlu1 %290 }
 0x120   :  { %v293_v30 = vsel %vm292_vm3, %v285_v1, %v289_v47  ;;  %v295_v48 = vsel %vm292_vm3, %v289_v47, %v285_v1  ;;  %v294_v51 = vsel %vm292_vm3, %v287_v12, %v291_v16  ;;  %v296_v49 = vsel %vm292_vm3, %v291_v16, %v287_v12 }
 0x121   :  { %v315_v55 = vmul.f32 %v310_v34, %v293_v30  ;;  %v316_v56 = vmul.f32 %v314_v22, %v295_v48  ;;  %v317_v57 = vmul.f32 %v310_v34, %v294_v51  ;;  %v318_v58 = vmul.f32 %v314_v22, %v296_v49 }
 0x123   :  { %v319_v54 = vadd.f32 %v315_v55, %v280_v45  ;;  %v320_v50 = vadd.f32 %v316_v56, %v281_v46  ;;  %v321_v59 = vadd.f32 %v317_v57, %v282_v44  ;;  %v322_v61 = vadd.f32 %v318_v58, %v283_v27 }
 0x125   :  { %v328_v62 = vadd.f32 %v326_v7, %v319_v54  ;;  %v329_v63 = vadd.f32 %v326_v7, %v320_v50  ;;  %v330_v4 = vadd.f32 %v326_v7, %v321_v59  ;;  %v331_v5 = vadd.f32 %v326_v7, %v322_v61 }
 0x127   :  { %v336_v9 = vcombine.low %v328_v62, %v329_v63  ;;  %v337_v10 = vcombine.low %v330_v4, %v331_v5 }
 0x129   :  { %v340_v11 = vmax.f32 %v444_v6, %v336_v9  ;;  %v341_v29 = vmax.f32 %v452_v8, %v337_v10 }
 0x12b   :  { %342 = vst [vmem:[#allocation2] sm:$0xff] %v340_v11  ;;  %343 = vst [vmem:[#allocation2 + $0x8] sm:$0xff] %v341_v29 }
 0x12c   :  { %384 = shalt.err (!%p381_p4)
}
 0x12d   :  { %s385_s17 = scalar_lea.hbm %s605_s3, 256 }
 0x12e   :  { %p386_p5 = scmp.ne.s32.totalorder %s605_s3, %s385_s17  ;;  %p389_p6 = scmp.lt.u32.totalorder %s385_s17, %s605_s3 }
 0x130   :  { %p391_p7 = pnand %p389_p6, %p386_p5 }
 0x132   :  { %394 = shalt.err (!%p391_p7)
}
 0x133   :  { %s404_s22 = smov 128   ;;  %s405_s23 = smov 8  }
 0x134   :  { %355 = dma.vmem_to_hbm [thread:$0]  %s350_s13, 256, %s605_s3, [#allocation3], %s404_s22, %s404_s22, %s405_s23  }
 0x135   :  { %395 = dma.done.wait [#allocation3], 256  }
 0x136   :  { %396 = vsyncadd [#allocation3], 4294967040 }
 0x137   :  { %359 = vsyncpa [#allocation3], 1 }

</bundles_post_ra>
